<compile_context>
chip_gen: v7x
topology: tpu7x:2x2x1
jax: 0.10.0
libtpu: 0.0.40
codegen_flags: <defaults>
</compile_context>

<pallas_src>
import functools

import jax
import jax.numpy as jnp
from jax import lax
from jax.experimental import pallas as pl
from jax.experimental.pallas import tpu as pltpu

IGNORE_INDEX = -100


def _round_up(x, m):
    return (x + m - 1) // m * m


def _nll_partial_kernel(pred_ref, tgt_ref, out_ref, *, pack):
    """Accumulate per-row-block partial sums of pred[i, target[i]].

    pred_ref: (row_tile, tile_c) native dtype (lane-packed view when pack > 1)
    tgt_ref : (row_tile, pack) int32 packed-lane targets (-1 => ignored / padded)
    out_ref : (8, tile_c) float32 -- resident accumulator across the class axis
    """
    j = pl.program_id(1)  # class-block index (reduction axis, last in grid)

    @pl.when(j == 0)
    def _():
        out_ref[...] = jnp.zeros_like(out_ref)

    pred = pred_ref[...]                               # (tn, tc) native dtype
    tgt = tgt_ref[...]                                 # (tn, pack) int32
    tn, tc = pred.shape

    lane = lax.broadcasted_iota(jnp.int32, (tn, tc), 1)
    # Fold the class-block offset into the tiny (tn, 1) target column instead
    # of adding it to the full-size iota (one fewer int32 VALU op per element).
    # Sentinel -1 / ignore_index targets are negative => never match a lane.
    onehot = lane == (tgt[:, 0:1] - j * tc)
    for k in range(1, pack):  # static unroll; pack > 1 only when tile_c == full width
        onehot = onehot | (lane == (tgt[:, k:k + 1] - j * tc))

    # Keep the select in pred's native dtype; only the reduction runs in f32.
    # TODO(synk): for bf16 inputs, folding at 16-row granularity would match the
    # packed-sublane vreg layout exactly (avoids potential repacks).
    picked = jnp.where(onehot, pred, jnp.zeros_like(pred))
    out_ref[...] += jnp.sum(
        picked.reshape(tn // 8, 8, tc), axis=0, dtype=jnp.float32
    )


@jax.jit
def nll_loss_pallas(pred, target):
    """pred: (N, C) log-probabilities, target: (N,) int class indices.

    Equivalent to F.nll_loss(pred, target) (reduction='mean', ignore_index=-100).
    Note: if every target is ignored the result is NaN, matching PyTorch.
    """
    n, c = pred.shape
    itemsize = jnp.dtype(pred.dtype).itemsize

    tgt = target.astype(jnp.int32)
    valid = tgt != IGNORE_INDEX

    # --- Small-C lane packing -------------------------------------------------
    # View pred as (N/pack, pack*C) (free row-major reshape) so every 128-lane
    # vreg row is fully used: ~(128/C)x less VMEM/VALU waste and dense stores.
    pack = 1
    if c < 128 and 128 % c == 0:
        p = 128 // c
        if p <= 16 and n % p == 0:     # keep the unrolled compare chain short
            pack = p
    # TODO(synk): small C that does not divide 128 (or ragged N) still streams
    # the plain (N, C) layout; a generalized pack and a scalar-prefetch gather
    # path for vocabulary-scale C (read only the target slabs) are further wins.

    nr = n // pack
    width = pack * c
    pred2d = pred.reshape(nr, width)

    # Packed-lane column of each row's target inside its packed row; -1 never
    # matches a lane, so ignored rows (and row padding) contribute exactly 0.
    col = jnp.where(valid, tgt + (jnp.arange(n, dtype=jnp.int32) % pack) * c, -1)
    tgt2d = col.reshape(nr, pack)

    # --- Tiling ---------------------------------------------------------------
    # Class tile: full width when moderate (block last dim == full dim is always
    # legal), else 2048 lanes so vocabulary-sized C never blows VMEM.
    tile_c = width if width <= 4096 else 2048
    num_class_blocks = pl.cdiv(width, tile_c)

    # Row tile: ~8 MiB per (pred + target) block pair.  The int32 target block
    # lane-pads to 128 in VMEM, so it is budgeted explicitly and rows are capped
    # (otherwise a small tile_c lets the target side blow the VMEM budget).
    pred_row_bytes = max(tile_c, 128) * itemsize
    tgt_row_bytes = 128 * 4
    budget = 8 * 1024 * 1024
    rows = max(8, budget // (pred_row_bytes + tgt_row_bytes))
    row_tile = min(rows // 8 * 8, 8192, _round_up(nr, 8))
    # Megacore balance: v7x has 2 TensorCores -> keep >= 2 "parallel" row blocks.
    if pl.cdiv(nr, row_tile) < 2 and row_tile > 8:
        row_tile = _round_up(pl.cdiv(row_tile, 2), 8)
    num_row_blocks = pl.cdiv(nr, row_tile)

    # Only the tiny target array is padded; pred streams unpadded from HBM and
    # the garbage tail of its last (partial) block is masked by the -1 targets.
    n_pad = num_row_blocks * row_tile
    tgt_p = jnp.full((n_pad, pack), -1, jnp.int32).at[:nr].set(tgt2d)

    # Deeper pred pipeline hides DMA jitter / per-step overhead (mainly v7x);
    # only request it when the grid actually has more than one step.
    pred_kwargs = {}
    if num_row_blocks * num_class_blocks > 1:
        pred_kwargs["pipeline_mode"] = pl.Buffered(3)
    pred_spec = pl.BlockSpec((row_tile, tile_c), lambda i, j: (i, j), **pred_kwargs)

    partials = pl.pallas_call(
        functools.partial(_nll_partial_kernel, pack=pack),
        out_shape=jax.ShapeDtypeStruct((num_row_blocks * 8, tile_c), jnp.float32),
        grid_spec=pltpu.PrefetchScalarGridSpec(
            num_scalar_prefetch=0,
            grid=(num_row_blocks, num_class_blocks),
            in_specs=[
                pred_spec,
                pl.BlockSpec((row_tile, pack), lambda i, j: (i, 0)),
            ],
            out_specs=pl.BlockSpec((8, tile_c), lambda i, j: (i, 0)),
        ),
        compiler_params=pltpu.CompilerParams(
            # Row axis parallel -> both v7x TensorCores; class axis is the
            # reduction into the resident output block.
            dimension_semantics=("parallel", "arbitrary"),
            vmem_limit_bytes=48 * 1024 * 1024,
        ),
    )(pred2d, tgt_p)

    # Final scalar reduction over the tiny partials array in plain JAX.
    # TODO(synk): PyTorch raises on targets outside [0, C) (other than -100);
    # here such rows are not checked (undefined on the packed path, contribute 0
    # but are counted on the streaming path).
    count = jnp.sum(valid).astype(jnp.float32)
    return (-jnp.sum(partials) / count).astype(pred.dtype)


if __name__ == "__main__":
    key = jax.random.PRNGKey(0)
    k1, k2, k3, k4 = jax.random.split(key, 4)

    # Test 1: small shapes matching the module's forward (batch of 8, 32 classes).
    # Exercises the small-C lane-packing path (pack = 4).
    N, C = 8, 32
    logits = jax.random.normal(k1, (N, C), jnp.float32)
    pred = jax.nn.log_softmax(logits, axis=-1)        # log-probabilities (NLL input)
    target = jax.random.randint(k2, (N,), 0, C, jnp.int32)

    loss = jax.block_until_ready(nll_loss_pallas(pred, target))
    ref = -jnp.mean(pred[jnp.arange(N), target])
    assert jnp.allclose(loss, ref, atol=1e-5, rtol=1e-5), (loss, ref)

    # Test 2: ragged sizes + ignore_index. Exercises the streaming path, partial
    # blocks / masking, the 2-block "parallel" row axis, and pl.Buffered(3).
    N2, C2 = 1037, 160
    logits2 = jax.random.normal(k3, (N2, C2), jnp.float32)
    pred2 = jax.nn.log_softmax(logits2, axis=-1)
    target2 = jax.random.randint(k4, (N2,), 0, C2, jnp.int32)
    target2 = jnp.where(jnp.arange(N2) % 7 == 0, IGNORE_INDEX, target2)

    loss2 = jax.block_until_ready(nll_loss_pallas(pred2, target2))
    valid2 = target2 != IGNORE_INDEX
    picked2 = pred2[jnp.arange(N2), jnp.where(valid2, target2, 0)]
    ref2 = -jnp.sum(jnp.where(valid2, picked2, 0.0)) / jnp.sum(valid2)
    assert jnp.allclose(loss2, ref2, atol=1e-5, rtol=1e-5), (loss2, ref2)

    print("KERNEL_OK")
</pallas_src>

<mosaic_0001>
module attributes {stable_mosaic.version = 11 : i64} {
  func.func @_nll_partial_kernel(%arg0: i32, %arg1: i32, %arg2: memref<8x128xf32, #tpu.memory_space<vmem>>, %arg3: memref<8x4xi32, #tpu.memory_space<vmem>>, %arg4: memref<8x128xf32, #tpu.memory_space<vmem>>) attributes {dimension_semantics = [#tpu.dimension_semantics<parallel>, #tpu.dimension_semantics<arbitrary>], iteration_bounds = array<i64: 1, 1>, scalar_prefetch = 0 : i64, scratch_operands = 0 : i64, tpu.core_type = #tpu.core_type<tc>, window_params = [{transform_indices = @transform_0, window_bounds = array<i64: 8, 128>}, {transform_indices = @transform_1, window_bounds = array<i64: 8, 4>}, {transform_indices = @transform_2, window_bounds = array<i64: 8, 128>}]} {
    %c0_i32 = arith.constant 0 : i32
    %0 = arith.cmpi eq, %arg1, %c0_i32 : i32
    %1 = arith.extui %0 : i1 to i32
    %c0_i32_0 = arith.constant 0 : i32
    %2 = arith.cmpi ne, %1, %c0_i32_0 : i32
    scf.if %2 {
      %cst_12 = arith.constant 0.000000e+00 : f32
      %40 = vector.broadcast %cst_12 : f32 to vector<8x128xf32>
      %c0_13 = arith.constant 0 : index
      %c0_14 = arith.constant 0 : index
      %41 = vector.load %arg4[%c0_13, %c0_14] : memref<8x128xf32, #tpu.memory_space<vmem>>, vector<8x128xf32>
      tpu.vector_store %arg4[%c0_13, %c0_14], %40 {strides = array<i32>} : memref<8x128xf32, #tpu.memory_space<vmem>>, vector<8x128xf32>,
    } else {
    }
    %c0 = arith.constant 0 : index
    %c0_1 = arith.constant 0 : index
    %3 = vector.load %arg2[%c0, %c0_1] : memref<8x128xf32, #tpu.memory_space<vmem>>, vector<8x128xf32>
    %c0_2 = arith.constant 0 : index
    %c0_3 = arith.constant 0 : index
    %4 = vector.load %arg3[%c0_2, %c0_3] : memref<8x4xi32, #tpu.memory_space<vmem>>, vector<8x4xi32>
    %5 = tpu.iota {dimensions = array<i32: 1>} : vector<8x128xi32>
    %6 = vector.extract_strided_slice %4 {offsets = [0, 0], sizes = [8, 1], strides = [1, 1]} : vector<8x4xi32> to vector<8x1xi32>
    %c128_i32 = arith.constant 128 : i32
    %7 = arith.muli %arg1, %c128_i32 : i32
    %8 = vector.broadcast %7 : i32 to vector<8x1xi32>
    %9 = arith.subi %6, %8 : vector<8x1xi32>
    %10 = vector.broadcast %9 : vector<8x1xi32> to vector<8x128xi32>
    %11 = arith.cmpi eq, %5, %10 : vector<8x128xi32>
    %12 = vector.extract_strided_slice %4 {offsets = [0, 1], sizes = [8, 1], strides = [1, 1]} : vector<8x4xi32> to vector<8x1xi32>
    %c128_i32_4 = arith.constant 128 : i32
    %13 = arith.muli %arg1, %c128_i32_4 : i32
    %14 = vector.broadcast %13 : i32 to vector<8x1xi32>
    %15 = arith.subi %12, %14 : vector<8x1xi32>
    %16 = vector.broadcast %15 : vector<8x1xi32> to vector<8x128xi32>
    %17 = arith.cmpi eq, %5, %16 : vector<8x128xi32>
    %18 = arith.ori %11, %17 : vector<8x128xi1>
    %19 = vector.extract_strided_slice %4 {offsets = [0, 2], sizes = [8, 1], strides = [1, 1]} : vector<8x4xi32> to vector<8x1xi32>
    %c128_i32_5 = arith.constant 128 : i32
    %20 = arith.muli %arg1, %c128_i32_5 : i32
    %21 = vector.broadcast %20 : i32 to vector<8x1xi32>
    %22 = arith.subi %19, %21 : vector<8x1xi32>
    %23 = vector.broadcast %22 : vector<8x1xi32> to vector<8x128xi32>
    %24 = arith.cmpi eq, %5, %23 : vector<8x128xi32>
    %25 = arith.ori %18, %24 : vector<8x128xi1>
    %26 = vector.extract_strided_slice %4 {offsets = [0, 3], sizes = [8, 1], strides = [1, 1]} : vector<8x4xi32> to vector<8x1xi32>
    %c128_i32_6 = arith.constant 128 : i32
    %27 = arith.muli %arg1, %c128_i32_6 : i32
    %28 = vector.broadcast %27 : i32 to vector<8x1xi32>
    %29 = arith.subi %26, %28 : vector<8x1xi32>
    %30 = vector.broadcast %29 : vector<8x1xi32> to vector<8x128xi32>
    %31 = arith.cmpi eq, %5, %30 : vector<8x128xi32>
    %32 = arith.ori %25, %31 : vector<8x128xi1>
    %cst = arith.constant 0.000000e+00 : f32
    %33 = vector.broadcast %cst : f32 to vector<8x128xf32>
    %34 = arith.select %32, %3, %33 : vector<8x128xi1>, vector<8x128xf32>
    %c0_7 = arith.constant 0 : index
    %c0_8 = arith.constant 0 : index
    %35 = vector.load %arg4[%c0_7, %c0_8] : memref<8x128xf32, #tpu.memory_space<vmem>>, vector<8x128xf32>
    %36 = vector.shape_cast %34 : vector<8x128xf32> to vector<1x8x128xf32>
    %cst_9 = arith.constant dense<0.000000e+00> : vector<8x128xf32>
    %37 = vector.multi_reduction <add>, %36, %cst_9 [0] : vector<1x8x128xf32> to vector<8x128xf32>
    %38 = arith.addf %35, %37 : vector<8x128xf32>
    %c0_10 = arith.constant 0 : index
    %c0_11 = arith.constant 0 : index
    %39 = vector.load %arg4[%c0_10, %c0_11] : memref<8x128xf32, #tpu.memory_space<vmem>>, vector<8x128xf32>
    tpu.vector_store %arg4[%c0_10, %c0_11], %38 {strides = array<i32>} : memref<8x128xf32, #tpu.memory_space<vmem>>, vector<8x128xf32>,
    return
  }
  func.func @transform_0(%arg0: i32, %arg1: i32) -> (i32, i32) {
    %c0_i32 = arith.constant 0 : i32
    return %arg0, %arg1 : i32, i32
  }
  func.func @transform_1(%arg0: i32, %arg1: i32) -> (i32, i32) {
    %c0_i32 = arith.constant 0 : i32
    %c0_i32_0 = arith.constant 0 : i32
    return %arg0, %c0_i32 : i32, i32
  }
  func.func @transform_2(%arg0: i32, %arg1: i32) -> (i32, i32) {
    %c0_i32 = arith.constant 0 : i32
    %c0_i32_0 = arith.constant 0 : i32
    return %arg0, %c0_i32 : i32, i32
  }
}

</mosaic_0001>

<bundles_post_ra>
// kernel: nll_loss_pallas.1
= control target key start
LH: loop header
LB: loop body
LE: loop exit
PB: predicated region body
PF: predicated region fallthrough
CT: control target
= control target key end

     0   :  { %v61_v0 = vmov 0   ;;  %v62_v2 = vmov 2   ;;  %v63_v3 = vmov 1   ;;  %v64_v4 = vmov 3   ;;  %s89_s1 = inlined_call_operand.vmem [shape: s32[8,4], index: 1, kind: input, shape index: {}]   ;;  %s90_s0 = inlined_call_operand.vmem [shape: f32[2,128], index: 0, kind: input, shape index: {}]   ;;  %s91_s2 = inlined_call_operand.vmem [shape: f32[8,128], index: 2, kind: output, shape index: {}]  }
   0x1   :  { %56 = vset.pattern.permute.xlu0 %v61_v0  ;;  %v17_v1 = vld [vmem:[%s89_s1] sm:$0xff]  ;;  %58 = vset.pattern.permute.xlu1 %v62_v2  ;;  %v18_v5 = vlaneseq }
   0x2   :  { %24 = vperm.xlu0 %56, %v17_v1   ;;  %33 = vperm.xlu1 %58, %v17_v1   ;;  %v16_v11 = vld [vmem:[%s90_s0] sm:$0xff] }
   0x3   :  { %v19_v8 = vand.u32 127, %v18_v5 }
   0x6   :  { %57 = vset.pattern.permute.xlu0 %v63_v3  ;;  %59 = vset.pattern.permute.xlu1 %v64_v4 }
   0x7   :  { %28 = vperm.xlu0 %57, %v17_v1   ;;  %38 = vperm.xlu1 %59, %v17_v1  }
   0xb   :  { %60 = vset.pattern.permute.xlu0 %v64_v4 }
  0x81   :  { %v25_v6 = vpop.permute.xlu0 %24  ;;  %v34_v7 = vpop.permute.xlu1 %33 }
  0x82   :  { %vm26_vm0 = vcmp.eq.s32.totalorder %v19_v8, %v25_v6  ;;  %vm35_vm3 = vcmp.eq.s32.totalorder %v19_v8, %v34_v7 }
  0x86   :  { %v29_v9 = vpop.permute.xlu0 %28  ;;  %v39_v10 = vpop.permute.xlu1 %38 }
  0x87   :  { %vm30_vm1 = vcmp.eq.s32.totalorder %v19_v8, %v29_v9  ;;  %vm40_vm2 = vcmp.eq.s32.totalorder %v19_v8, %v39_v10 }
  0x88   :  { %vm31_vm4 = vmor %vm26_vm0, %vm30_vm1 }
  0x89   :  { %vm36_vm5 = vmor %vm31_vm4, %vm35_vm3 }
  0x8a   :  { %vm41_vm6 = vmor %vm36_vm5, %vm40_vm2 }
  0x8b   :  { %v42_v12 = vsel %vm41_vm6, %v16_v11, 0.0 }
  0x8c   :  { %46 = vst [vmem:[%s91_s2] sm:$0xff] %v42_v12 }

</bundles_post_ra>
